<compile_context>
chip_gen: v6e
topology: v6e:2x2x1
jax: 0.10.0
libtpu: 0.0.40
codegen_flags: <defaults>
</compile_context>

<pallas_src>
import functools

import jax
import jax.numpy as jnp
import numpy as np
from jax.experimental import pallas as pl
from jax.experimental.pallas import tpu as pltpu


def _round_up(x, m):
    return ((x + m - 1) // m) * m


# ----------------------------- kernel ---------------------------------------
def _highway_kernel(x_ref, w_ref, b_ref, o_ref, *, n_layers, d):
    """One (TM, D) row tile through all n highway layers.

    x_ref : (TM, D)        activation tile (input dtype)
    w_ref : (n, D, 2D)     bf16, [Wl^T | Wg^T] concatenated on the last axis
    b_ref : (n, 1, 2D)     f32,  [bl   | bg  ] concatenated on the last axis
    o_ref : (TM, D)        output tile (input dtype)
    """
    x = x_ref[...].astype(jnp.float32)                        # (TM, D) f32
    for i in range(n_layers):                                 # static unroll (small n)
        # Single fused matmul: bf16 operands, f32 accumulation on the MXU.
        y = jnp.dot(x.astype(jnp.bfloat16), w_ref[i],
                    preferred_element_type=jnp.float32) + b_ref[i]   # (TM, 2D)
        lin = y[:, :d]                                        # linear branch
        z = y[:, d:]                                          # gate pre-activation
        gate = pl.reciprocal(1.0 + jnp.exp(-z), approx=True)  # sigmoid (EUP exp+recip)
        x = x + gate * (jnp.maximum(lin, 0.0) - x)            # gated residual blend
    o_ref[...] = x.astype(o_ref.dtype)


# ------------------------- one-time weight prep ------------------------------
def prepare_highway_params(w_lin, b_lin, w_gate, b_gate):
    """Hoisted re-layout (do once at parameter-prep time, not per forward).

    w_lin / w_gate : (n, D, D) in PyTorch nn.Linear (out, in) convention
    b_lin / b_gate : (n, D)

    Returns:
      W : (n, D, 2D) bf16 = concat([Wl^T, Wg^T], axis=-1)   (so x @ W == [lin|z])
      b : (n, 1, 2D) f32  = concat([bl,   bg  ], axis=-1)
    """
    n, D, _ = w_lin.shape
    wl_t = jnp.swapaxes(w_lin, -1, -2)
    wg_t = jnp.swapaxes(w_gate, -1, -2)
    W = jnp.concatenate([wl_t, wg_t], axis=-1).astype(jnp.bfloat16)        # (n, D, 2D)
    b = jnp.concatenate([b_lin, b_gate], axis=-1).astype(jnp.float32)      # (n, 2D)
    return W, b.reshape(n, 1, 2 * D)


# ------------------------------- wrapper -------------------------------------
def _choose_tm(M, D, n_layers, x_bytes, o_bytes, budget_bytes):
    # Resident weights/biases (double-buffered by the pipeline even though the
    # index_map is constant).
    w_bytes = 2 * (n_layers * D * 2 * D * 2 + n_layers * 2 * D * 4)
    tm = 2048
    while tm > 8:
        io_bytes = 2 * tm * D * (x_bytes + o_bytes)   # double-buffered in/out tiles
        tmp_bytes = 8 * tm * D * 4                    # f32 temporaries (x, y, gate, ...)
        if w_bytes + io_bytes + tmp_bytes <= budget_bytes:
            break
        tm //= 2
    # Keep >=4 grid steps when the problem is big enough (megacore sharding on
    # v7x + pipeline depth); never exceed the (sublane-rounded) row count.
    tm = min(tm, max(8, _round_up(pl.cdiv(M, 4), 8)))
    tm = max(8, min(tm, _round_up(M, 8)))
    return tm


def highway_apply(x, W, b, *, vmem_budget_bytes=40 * 1024 * 1024):
    """Forward pass of Highway with kernel-ready params from prepare_highway_params.

    x : (..., D) float (any float dtype; output dtype matches input dtype)
    """
    orig_shape = x.shape
    D = int(orig_shape[-1])
    D2 = 2 * D
    n_layers = int(W.shape[0])
    M = int(np.prod(orig_shape[:-1]))

    x2 = x.reshape(M, D)                                   # keep input dtype (no upcast)
    x_bytes = jnp.dtype(x.dtype).itemsize
    tm = _choose_tm(M, D, n_layers, x_bytes, x_bytes, vmem_budget_bytes)
    grid = (pl.cdiv(M, tm),)                               # partial tail block is masked

    kernel = functools.partial(_highway_kernel, n_layers=n_layers, d=D)

    cost = pl.CostEstimate(
        flops=int(n_layers * (2 * M * D * D2 + 8 * M * D)),
        transcendentals=int(n_layers * M * D),             # sigmoid exp
        bytes_accessed=int(2 * M * D * x_bytes             # x read + out write
                           + n_layers * D * D2 * 2         # bf16 weights
                           + n_layers * D2 * 4),           # f32 biases
    )

    out = pl.pallas_call(
        kernel,
        out_shape=jax.ShapeDtypeStruct((M, D), x.dtype),
        grid=grid,
        in_specs=[
            pl.BlockSpec((tm, D), lambda i: (i, 0)),                  # x tile
            pl.BlockSpec((n_layers, D, D2), lambda i: (0, 0, 0)),     # [Wl^T|Wg^T] resident
            pl.BlockSpec((n_layers, 1, D2), lambda i: (0, 0, 0)),     # [bl|bg]     resident
        ],
        out_specs=pl.BlockSpec((tm, D), lambda i: (i, 0)),
        compiler_params=pltpu.CompilerParams(
            dimension_semantics=("parallel",),    # independent row tiles
            vmem_limit_bytes=48 * 1024 * 1024,    # safe on v7x (64 MiB/TC); ample here
        ),
        cost_estimate=cost,
    )(x2, W, b)

    return out.reshape(orig_shape)


def highway_forward(x, w_lin, b_lin, w_gate, b_gate):
    """Convenience path taking PyTorch-convention params (prep done inline)."""
    W, b = prepare_highway_params(w_lin, b_lin, w_gate, b_gate)
    return highway_apply(x, W, b)


# ---------------- pure-NumPy reference (mirrors the PyTorch forward) ---------
def _reference_forward(x, w_lin, b_lin, w_gate, b_gate):
    x = np.asarray(x, np.float64)
    n = w_lin.shape[0]
    for i in range(n):
        z = x @ np.asarray(w_gate[i], np.float64).T + np.asarray(b_gate[i], np.float64)
        gate = 1.0 / (1.0 + np.exp(-z))
        lin = x @ np.asarray(w_lin[i], np.float64).T + np.asarray(b_lin[i], np.float64)
        nonlinear = np.maximum(lin, 0.0)
        x = gate * nonlinear + (1.0 - gate) * x
    return x.astype(np.float32)


if __name__ == "__main__":
    key = jax.random.PRNGKey(0)
    n_layers, size = 2, 128          # lane-dense hidden size (multiple of 128)
    B, S = 2, 8
    ks = jax.random.split(key, 5)

    x = jax.random.normal(ks[0], (B, S, size), dtype=jnp.float32)
    w_lin = 0.05 * jax.random.normal(ks[1], (n_layers, size, size), dtype=jnp.float32)
    b_lin = 0.05 * jax.random.normal(ks[2], (n_layers, size), dtype=jnp.float32)
    w_gate = 0.05 * jax.random.normal(ks[3], (n_layers, size, size), dtype=jnp.float32)
    b_gate = 0.05 * jax.random.normal(ks[4], (n_layers, size), dtype=jnp.float32)

    # One-time param re-layout (out of the per-call path), then apply.
    W, b = prepare_highway_params(w_lin, b_lin, w_gate, b_gate)
    out = jax.block_until_ready(highway_apply(x, W, b))

    ref = _reference_forward(np.asarray(x), np.asarray(w_lin), np.asarray(b_lin),
                             np.asarray(w_gate), np.asarray(b_gate))

    # Tolerance covers bf16 MXU operands (f32 accumulation) + approx reciprocal.
    if np.allclose(np.asarray(out, np.float32), ref, atol=2e-2, rtol=2e-2):
        print("KERNEL_OK")
    else:
        print("MISMATCH max_abs_err={}".format(
            np.max(np.abs(np.asarray(out, np.float32) - ref))))
</pallas_src>

<mosaic_0001>
module attributes {stable_mosaic.version = 11 : i64} {
  func.func @_highway_kernel(%arg0: i32, %arg1: memref<8x128xf32, #tpu.memory_space<vmem>>, %arg2: memref<2x128x256xbf16, #tpu.memory_space<vmem>>, %arg3: memref<2x1x256xf32, #tpu.memory_space<vmem>>, %arg4: memref<8x128xf32, #tpu.memory_space<vmem>>) attributes {dimension_semantics = [#tpu.dimension_semantics<parallel>], iteration_bounds = array<i64: 2>, scalar_prefetch = 0 : i64, scratch_operands = 0 : i64, tpu.core_type = #tpu.core_type<tc>, window_params = [{transform_indices = @transform_0, window_bounds = array<i64: 8, 128>}, {pipeline_mode = #tpu.pipeline_mode<synchronous>, transform_indices = @transform_1, window_bounds = array<i64: 2, 128, 256>}, {pipeline_mode = #tpu.pipeline_mode<synchronous>, transform_indices = @transform_2, window_bounds = array<i64: 2, 1, 256>}, {transform_indices = @transform_3, window_bounds = array<i64: 8, 128>}]} {
    %c0 = arith.constant 0 : index
    %c0_0 = arith.constant 0 : index
    %0 = vector.load %arg1[%c0, %c0_0] : memref<8x128xf32, #tpu.memory_space<vmem>>, vector<8x128xf32>
    %1 = arith.truncf %0 : vector<8x128xf32> to vector<8x128xbf16>
    %c0_1 = arith.constant 0 : index
    %c0_2 = arith.constant 0 : index
    %c0_3 = arith.constant 0 : index
    %2 = vector.load %arg2[%c0_1, %c0_2, %c0_3] : memref<2x128x256xbf16, #tpu.memory_space<vmem>>, vector<1x128x256xbf16>
    %3 = vector.shape_cast %2 : vector<1x128x256xbf16> to vector<128x256xbf16>
    %cst = arith.constant dense<0.000000e+00> : vector<8x256xf32>
    %4 = tpu.matmul %1, %3, %cst {dimension_numbers = #tpu.dot_dimension_numbers<[1], [0], [0], [1], [0, 0, 1, 1], [], []>} : vector<8x128xbf16>, vector<128x256xbf16>, vector<8x256xf32> -> vector<8x256xf32>
    %c0_4 = arith.constant 0 : index
    %c0_5 = arith.constant 0 : index
    %c0_6 = arith.constant 0 : index
    %5 = vector.load %arg3[%c0_4, %c0_5, %c0_6] : memref<2x1x256xf32, #tpu.memory_space<vmem>>, vector<1x1x256xf32>
    %6 = vector.shape_cast %5 : vector<1x1x256xf32> to vector<1x256xf32>
    %7 = vector.broadcast %6 : vector<1x256xf32> to vector<8x256xf32>
    %8 = arith.addf %4, %7 : vector<8x256xf32>
    %9 = vector.extract_strided_slice %8 {offsets = [0, 0], sizes = [8, 128], strides = [1, 1]} : vector<8x256xf32> to vector<8x128xf32>
    %10 = vector.extract_strided_slice %8 {offsets = [0, 128], sizes = [8, 128], strides = [1, 1]} : vector<8x256xf32> to vector<8x128xf32>
    %cst_7 = arith.constant 0.000000e+00 : f32
    %11 = vector.broadcast %cst_7 : f32 to vector<8x128xf32>
    %12 = arith.subf %11, %10 : vector<8x128xf32>
    %13 = math.exp %12 : vector<8x128xf32>
    %cst_8 = arith.constant 1.000000e+00 : f32
    %14 = vector.broadcast %cst_8 : f32 to vector<8x128xf32>
    %15 = arith.addf %14, %13 : vector<8x128xf32>
    %16 = tpu.reciprocal %15 {approx = true} : vector<8x128xf32> -> vector<8x128xf32>
    %cst_9 = arith.constant 0.000000e+00 : f32
    %17 = vector.broadcast %cst_9 : f32 to vector<8x128xf32>
    %18 = arith.maximumf %9, %17 : vector<8x128xf32>
    %19 = arith.subf %18, %0 : vector<8x128xf32>
    %20 = arith.mulf %16, %19 : vector<8x128xf32>
    %21 = arith.addf %0, %20 : vector<8x128xf32>
    %22 = arith.truncf %21 : vector<8x128xf32> to vector<8x128xbf16>
    %c1 = arith.constant 1 : index
    %c0_10 = arith.constant 0 : index
    %c0_11 = arith.constant 0 : index
    %23 = vector.load %arg2[%c1, %c0_10, %c0_11] : memref<2x128x256xbf16, #tpu.memory_space<vmem>>, vector<1x128x256xbf16>
    %24 = vector.shape_cast %23 : vector<1x128x256xbf16> to vector<128x256xbf16>
    %cst_12 = arith.constant dense<0.000000e+00> : vector<8x256xf32>
    %25 = tpu.matmul %22, %24, %cst_12 {dimension_numbers = #tpu.dot_dimension_numbers<[1], [0], [0], [1], [0, 0, 1, 1], [], []>} : vector<8x128xbf16>, vector<128x256xbf16>, vector<8x256xf32> -> vector<8x256xf32>
    %c1_13 = arith.constant 1 : index
    %c0_14 = arith.constant 0 : index
    %c0_15 = arith.constant 0 : index
    %26 = vector.load %arg3[%c1_13, %c0_14, %c0_15] : memref<2x1x256xf32, #tpu.memory_space<vmem>>, vector<1x1x256xf32>
    %27 = vector.shape_cast %26 : vector<1x1x256xf32> to vector<1x256xf32>
    %28 = vector.broadcast %27 : vector<1x256xf32> to vector<8x256xf32>
    %29 = arith.addf %25, %28 : vector<8x256xf32>
    %30 = vector.extract_strided_slice %29 {offsets = [0, 0], sizes = [8, 128], strides = [1, 1]} : vector<8x256xf32> to vector<8x128xf32>
    %31 = vector.extract_strided_slice %29 {offsets = [0, 128], sizes = [8, 128], strides = [1, 1]} : vector<8x256xf32> to vector<8x128xf32>
    %cst_16 = arith.constant 0.000000e+00 : f32
    %32 = vector.broadcast %cst_16 : f32 to vector<8x128xf32>
    %33 = arith.subf %32, %31 : vector<8x128xf32>
    %34 = math.exp %33 : vector<8x128xf32>
    %cst_17 = arith.constant 1.000000e+00 : f32
    %35 = vector.broadcast %cst_17 : f32 to vector<8x128xf32>
    %36 = arith.addf %35, %34 : vector<8x128xf32>
    %37 = tpu.reciprocal %36 {approx = true} : vector<8x128xf32> -> vector<8x128xf32>
    %cst_18 = arith.constant 0.000000e+00 : f32
    %38 = vector.broadcast %cst_18 : f32 to vector<8x128xf32>
    %39 = arith.maximumf %30, %38 : vector<8x128xf32>
    %40 = arith.subf %39, %21 : vector<8x128xf32>
    %41 = arith.mulf %37, %40 : vector<8x128xf32>
    %42 = arith.addf %21, %41 : vector<8x128xf32>
    %c0_19 = arith.constant 0 : index
    %c0_20 = arith.constant 0 : index
    %43 = vector.load %arg4[%c0_19, %c0_20] : memref<8x128xf32, #tpu.memory_space<vmem>>, vector<8x128xf32>
    tpu.vector_store %arg4[%c0_19, %c0_20], %42 {strides = array<i32>} : memref<8x128xf32, #tpu.memory_space<vmem>>, vector<8x128xf32>,
    return
  }
  func.func @transform_0(%arg0: i32) -> (i32, i32) {
    %c0_i32 = arith.constant 0 : i32
    %c0_i32_0 = arith.constant 0 : i32
    return %arg0, %c0_i32 : i32, i32
  }
  func.func @transform_1(%arg0: i32) -> (i32, i32, i32) {
    %c0_i32 = arith.constant 0 : i32
    %c0_i32_0 = arith.constant 0 : i32
    %c0_i32_1 = arith.constant 0 : i32
    %c0_i32_2 = arith.constant 0 : i32
    return %c0_i32, %c0_i32_0, %c0_i32_1 : i32, i32, i32
  }
  func.func @transform_2(%arg0: i32) -> (i32, i32, i32) {
    %c0_i32 = arith.constant 0 : i32
    %c0_i32_0 = arith.constant 0 : i32
    %c0_i32_1 = arith.constant 0 : i32
    %c0_i32_2 = arith.constant 0 : i32
    return %c0_i32, %c0_i32_0, %c0_i32_1 : i32, i32, i32
  }
  func.func @transform_3(%arg0: i32) -> (i32, i32) {
    %c0_i32 = arith.constant 0 : i32
    %c0_i32_0 = arith.constant 0 : i32
    return %arg0, %c0_i32 : i32, i32
  }
}

</mosaic_0001>

<bundles_post_ra>
// kernel: tpu_custom_call.1
= control target key start
LH: loop header
LB: loop body
LE: loop exit
PB: predicated region body
PF: predicated region fallthrough
CT: control target
= control target key end

     0   :  { %8 = vsyncpa [#allocation3], 0  ;;  %s1168_s0 = inlined_call_operand.hbm [shape: f32[16,128], index: 0, kind: input, shape index: {}]   ;;  %s1169_s1 = inlined_call_operand.hbm [shape: bf16[2,128,256], index: 1, kind: input, shape index: {}]   ;;  %s1170_s2 = inlined_call_operand.hbm [shape: f32[2,1,256], index: 2, kind: input, shape index: {}]   ;;  %s1171_s3 = inlined_call_operand.hbm [shape: f32[16,128], index: 3, kind: output, shape index: {}]  }
   0x1   :  { %10 = vsyncpa [#allocation3 + $0x1], 0 }
   0x2   :  { %11 = vsyncpa [#allocation6], 0 }
   0x3   :  { %12 = vsyncpa [#allocation4], 0 }
   0x4   :  { %14 = vsyncpa [#allocation4 + $0x1], 0  ;;  %s996_s12 = smov 0   ;;  %s998_s13 = smov 0  }
   0x5   :  { %s1000_s14 = smov 0   ;;  %s1002_s15 = smov 0  }
   0x6 LB: > { %s1017_s16 = sadd.s32 4294967295, %s965_s15   ;;  %s641_s17 = sadd.s32 4294967294, %s965_s15   ;;  %s965_s15 = sphi %s1002_s15, %s1193_s15   ;;  %s961_s14 = sphi %s1000_s14, %s1192_s14   ;;  %s957_s13 = sphi %s998_s13, %s1191_s13   ;;  %s953_s12 = sphi %s996_s12, %s1190_s12  }
   0x7   : > { %p40_p0 = scmp.ne.s32.totalorder %s957_s13, %s953_s12  ;;  %p1172_p1 = scmp.eq.s32.totalorder %s1017_s16, 0 }
   0x8   : > { %p112_p3 = scmp.eq.s32.totalorder %s641_s17, 1  ;;  %p642_p5 = scmp.ge.s32.totalorder %s965_s15, 1 }
   0x9   : > { %p1026_p4 = por %p1172_p1, %p40_p0  ;;  %p119_p7 = scmp.lt.s32.totalorder %s965_s15, 3 }
   0xa   : > { %p1031_p6 = por %p112_p3, %p40_p0  ;;  %s967_s21 = smov [#allocation5]  }
   0xb   : > { %s1176_s18 = scalar_select %p1026_p4, 1, 0 }
   0xc   : > { %s1177_s19 = scalar_select %p1031_p6, 1, 0 }
   0xd   : > { %p1036_p8 = pnand %p642_p5, %p119_p7  ;;  %s131_s22 = sshll.u32 %s967_s21, 4  ;;  %s132_s22 = int_to_ptr.vmem [resolvable:$true] %s131_s22 }
   0xe   : > { %s968_s24 = smov [#allocation7]   ;;  %s828_s26 = scalar_lea.vmem %s132_s22, 4096 }
   0xf   : > { %s1178_s20 = scalar_select %p1036_p8, 1, 0 }
  0x10   : > { %p701_p9 = pneg %p1036_p8  ;;  %s144_s25 = sshll.u32 %s968_s24, 4  ;;  %s145_s25 = int_to_ptr.vmem [resolvable:$true] %s144_s25 }
  0x11   : > { %p829_p13 = scmp.ne.s32.totalorder %s132_s22, %s828_s26  ;;  %p836_p5 = scmp.lt.s32.totalorder %s132_s22, %s132_s22 }
  0x12   : > { %p1045_p11 = pnand %p701_p9, %p1172_p1  ;;  %p837_p7 = scmp.lt.s32.totalorder %s828_s26, %s828_s26 }
  0x14   : > { %p819_p12 = pneg %p1045_p11  ;;  %p838_p10 = por %p837_p7, %p836_p5 }
  0x16   : > { %p831_p0 = pnand %p829_p13, %p819_p12 }
  0x18   : > { %p832_p3 = pneg %p831_p0 }
  0x1a   : > { %p839_p9 = pnand %p838_p10, %p832_p3 }
  0x1c   : > { %842 = shalt.err (!%p839_p9)
}
  0x1d   : > { %s969_s27 = smov 128   ;;  %s970_s28 = smov 8  }
  0x1e   : > { %704 = dma.hbm_to_vmem [thread:$0]  (!%p1045_p11), %s1169_s1, 4096, %s132_s22, [#allocation6], %s969_s27, %s969_s27, %s970_s28  }
  0x1f   : > { %s854_s4 = scalar_lea.vmem %s145_s25, 64  ;;  %p862_p2 = scmp.lt.s32.totalorder %s145_s25, %s145_s25 }
  0x20   : > { %p855_p1 = scmp.ne.s32.totalorder %s145_s25, %s854_s4  ;;  %p863_p6 = scmp.lt.s32.totalorder %s854_s4, %s854_s4 }
  0x22   : > { %p857_p13 = pnand %p855_p1, %p819_p12  ;;  %p864_p5 = por %p863_p6, %p862_p2 }
  0x24   : > { %p858_p0 = pneg %p857_p13 }
  0x26   : > { %p865_p10 = pnand %p864_p5, %p858_p0 }
  0x28   : > { %868 = shalt.err (!%p865_p10)
}
  0x29   : > { %s971_s5 = smov 32   ;;  %s972_s6 = smov 2  }
  0x2a   : > { %707 = dma.hbm_to_vmem [thread:$0]  (!%p1045_p11), %s1170_s2, 64, %s145_s25, [#allocation6], %s971_s5, %s971_s5, %s972_s6  }
  0x2b   : > { %s1068_s9 = sadd.s32 1, %s965_s15   ;;  %s27_s11 = sadd.s32 1, %s961_s14 }
  0x2c   : > { %s24_s10 = ssub.s32 %s965_s15, %s1068_s9  ;;  %p34_p2 = scmp.ne.s32.totalorder %s961_s14, %s957_s13 }
  0x2d   : > { %p25_p1 = scmp.eq.s32.totalorder %s24_s10, 0  ;;  %p35_p6 = scmp.eq.s32.totalorder %s965_s15, 0 }
  0x2e   : > { %p1180_p3 = scmp.eq.s32.totalorder %s1017_s16, 1  ;;  %p718_p9 = scmp.lt.s32.totalorder %s965_s15, 2 }
  0x2f   : > { %s1077_s17 = scalar_select %p25_p1, %s961_s14, %s27_s11  }
  0x30   : > { %p36_p12 = por %p35_p6, %p34_p2  ;;  %p1081_p7 = por %p1180_p3, %p34_p2 }
  0x31   : > { %s158_s22 = sand.u32 1, %s961_s14   ;;  %s647_s24 = sshll.u32 %s965_s15, 7 }
  0x32   : > { %s1181_s21 = scalar_select %p1081_p7, 1, 0 }
  0x33   : > { %s646_s23 = sshll.u32 %s158_s22, 3  ;;  %s1091_s27 = scalar_lea.hbm %s1168_s0, %s647_s24 }
  0x34   : > { %s162_s28 = scalar_lea.vmem [#allocation2], %s646_s23  ;;  %p1093_p11 = pnand %p718_p9, %p36_p12 }
  0x35   : > { %s169_s29 = sshll.u32 %s162_s28, 4  ;;  %s159_s4 = scalar_lea.sflag [#allocation3], %s158_s22  ;;  %s170_s29 = int_to_ptr.vmem [resolvable:$true] %s169_s29 }
  0x36   : > { %s869_s5 = scalar_lea.hbm %s1091_s27, 128  ;;  %p871_p0 = pneg %p1093_p11 }
  0x37   : > { %p870_p13 = scmp.ne.s32.totalorder %s1091_s27, %s869_s5  ;;  %s874_s8 = scalar_lea.hbm %s1168_s0, 256 }
  0x38   : > { %p875_p1 = scmp.lt.s32.totalorder %s1091_s27, %s1168_s0  ;;  %p876_p2 = scmp.lt.s32.totalorder %s874_s8, %s869_s5 }
  0x39   : > { %p872_p5 = pnand %p871_p0, %p870_p13 }
  0x3a   : > { %p877_p6 = por %p876_p2, %p875_p1 }
  0x3b   : > { %p873_p10 = pneg %p872_p5 }
  0x3d   : > { %p878_p12 = pnand %p877_p6, %p873_p10 }
  0x3f   : > { %881 = shalt.err (!%p878_p12)
}
  0x40   : > { %s882_s23 = scalar_lea.vmem %s170_s29, 128  ;;  %s973_s22 = smov [#allocation2]  }
  0x41   : > { %p883_p3 = scmp.ne.s32.totalorder %s170_s29, %s882_s23  ;;  %s887_s24 = sshll.u32 %s973_s22, 4  ;;  %s888_s24 = int_to_ptr.vmem [resolvable:$false] %s887_s24 }
  0x42   : > { %s889_s25 = scalar_lea.vmem %s888_s24, 256  ;;  %p890_p13 = scmp.lt.s32.totalorder %s170_s29, %s888_s24 }
  0x43   : > { %p885_p9 = pnand %p883_p3, %p871_p0  ;;  %p891_p5 = scmp.lt.s32.totalorder %s889_s25, %s882_s23 }
  0x45   : > { %p886_p7 = pneg %p885_p9  ;;  %p892_p4 = por %p891_p5, %p890_p13 }
  0x47   : > { %p893_p8 = pnand %p892_p4, %p886_p7 }
  0x49   : > { %896 = shalt.err (!%p893_p8)
}
  0x4a   : > { %711 = dma.hbm_to_vmem [thread:$0]  (!%p1093_p11), %s1091_s27, 128, %s170_s29, %s159_s4  }
  0x4b   : > { %p1183_p10 = scmp.ne.s32.totalorder %s1178_s20, 0 }
  0x4c   : > { %s1114_s26 = sand.u32 (!%p1183_p10), 1, %s957_s13   ;;  %p1184_p4 = scmp.ne.s32.totalorder (!%p1183_p10), %s1176_s18, 0 }
  0x4d   : > { %178 = sbr.rel (%p1183_p10) target bundleno = 605 (0x25d), region = 32  ;;  %s649_s28 = sshll.u32 (!%p1183_p10), %s1114_s26, 3 }
  0x4e   : > { %s181_s5 = scalar_lea.sflag (!%p1183_p10), [#allocation3], %s1114_s26  ;;  %s1120_s6 = scalar_lea.vmem (!%p1183_p10), [#allocation2], %s649_s28 }
  0x52   : > { %940 = dma.done.wait (%p1184_p4), %s181_s5, 128  }
  0x53   : > { %942 = vsyncadd (%p1184_p4), %s181_s5, 4294967168  ;;  %p1185_p8 = scmp.eq.s32.totalorder %s1017_s16, 0 }
  0x55   : > { %944 = dma.done.wait (%p1185_p8), [#allocation6], 4160   ;;  %p1186_p7 = pmov %p1185_p8 }
  0x56   : > { %v974_v0 = vmov 0   ;;  %v761_v1 = vld [vmem:[#allocation5 + $0x74] ss:$8 sps:$4 sm:$0xff]   ;;  %v763_v2 = vld [vmem:[#allocation5 + $0x70] ss:$8 sps:$4 sm:$0xff]   ;;  %v236_v35 = vlaneseq  ;;  %s686_s18 = sshll.u32 %s1017_s16, 7 }
  0x57   : > { %946 = vsyncadd (%p1186_p7), [#allocation6], 4294963136  ;;  %358 = vmatprep.mubr.bf16.mxu0 %v974_v0  ;;  %519 = vmatprep.mubr.bf16.mxu1 %v974_v0  ;;  %v764_v3 = vld [vmem:[#allocation5 + $0x64] ss:$8 sps:$4 sm:$0xff]   ;;  %v766_v4 = vld [vmem:[#allocation5 + $0x60] ss:$8 sps:$4 sm:$0xff]   ;;  %s550_s4 = scalar_lea.hbm %s1171_s3, %s686_s18 }
  0x58   : > { %326 = vmatprep.subr.bf16.mxu0 %v761_v1  ;;  %v767_v5 = vld [vmem:[#allocation5 + $0x54] ss:$8 sps:$4 sm:$0xff]   ;;  %v769_v6 = vld [vmem:[#allocation5 + $0x50] ss:$8 sps:$4 sm:$0xff]   ;;  %v770_v7 = vld [vmem:[#allocation5 + $0x44] ss:$8 sps:$4 sm:$0xff]  }
  0x59   : > { %327 = vmatpush1.bf16.msra.mxu0 %v763_v2  ;;  %v772_v8 = vld [vmem:[#allocation5 + $0x40] ss:$8 sps:$4 sm:$0xff]   ;;  %v773_v9 = vld [vmem:[#allocation5 + $0x34] ss:$8 sps:$4 sm:$0xff]   ;;  %v775_v10 = vld [vmem:[#allocation5 + $0x30] ss:$8 sps:$4 sm:$0xff]  }
  0x5a   : > { %328 = vmatprep.subr.bf16.mxu0 %v764_v3  ;;  %v776_v11 = vld [vmem:[#allocation5 + $0x24] ss:$8 sps:$4 sm:$0xff]   ;;  %v778_v12 = vld [vmem:[#allocation5 + $0x20] ss:$8 sps:$4 sm:$0xff]   ;;  %v779_v13 = vld [vmem:[#allocation5 + $0x14] ss:$8 sps:$4 sm:$0xff]  }
  0x5b   : > { %v781_v14 = vld [vmem:[#allocation5 + $0x10] ss:$8 sps:$4 sm:$0xff]   ;;  %v782_v15 = vld [vmem:[#allocation5 + $0x4] ss:$8 sps:$4 sm:$0xff]   ;;  %v784_v16 = vld [vmem:[#allocation5] ss:$8 sps:$4 sm:$0xff]  }
  0x5c   : > { %v216_v17 = vld [vmem:[%s1120_s6] sm:$0xff]  ;;  %v788_v21 = vld [vmem:[#allocation5 + $0xe4] ss:$8 sps:$4 sm:$0xff]   ;;  %v790_v22 = vld [vmem:[#allocation5 + $0xe0] ss:$8 sps:$4 sm:$0xff]   ;;  %v237_v36 = vshrl.u32 %v236_v35, 7 }
  0x5d   : > { %329 = vmatpush1.bf16.msra.mxu0 %v766_v4  ;;  %v217_v18 = vpack.c.bf16 %v216_v17, %v216_v17  ;;  %v785_v19 = vld [vmem:[#allocation5 + $0xf4] ss:$8 sps:$4 sm:$0xff]   ;;  %v787_v20 = vld [vmem:[#allocation5 + $0xf0] ss:$8 sps:$4 sm:$0xff]   ;;  %v794_v25 = vld [vmem:[#allocation5 + $0xc4] ss:$8 sps:$4 sm:$0xff]  }
  0x5e   : > { %330 = vmatprep.subr.bf16.mxu0 %v767_v5  ;;  %487 = vmatprep.subr.bf16.mxu1 %v785_v19  ;;  %v791_v23 = vld [vmem:[#allocation5 + $0xd4] ss:$8 sps:$4 sm:$0xff]   ;;  %v793_v24 = vld [vmem:[#allocation5 + $0xd0] ss:$8 sps:$4 sm:$0xff]   ;;  %v796_v26 = vld [vmem:[#allocation5 + $0xc0] ss:$8 sps:$4 sm:$0xff]  }
  0x5f   : > { %488 = vmatpush1.bf16.msra.mxu1 %v787_v20  ;;  %v797_v27 = vld [vmem:[#allocation5 + $0xb4] ss:$8 sps:$4 sm:$0xff]   ;;  %v799_v28 = vld [vmem:[#allocation5 + $0xb0] ss:$8 sps:$4 sm:$0xff]   ;;  %v800_v29 = vld [vmem:[#allocation5 + $0xa4] ss:$8 sps:$4 sm:$0xff]  }
  0x60   : > { %489 = vmatprep.subr.bf16.mxu1 %v788_v21  ;;  %v802_v30 = vld [vmem:[#allocation5 + $0xa0] ss:$8 sps:$4 sm:$0xff]   ;;  %v803_v31 = vld [vmem:[#allocation5 + $0x94] ss:$8 sps:$4 sm:$0xff]   ;;  %v805_v32 = vld [vmem:[#allocation5 + $0x90] ss:$8 sps:$4 sm:$0xff]  }
  0x61   : > { %331 = vmatpush1.bf16.msra.mxu0 %v769_v6  ;;  %v806_v33 = vld [vmem:[#allocation5 + $0x84] ss:$8 sps:$4 sm:$0xff]   ;;  %v808_v34 = vld [vmem:[#allocation5 + $0x80] ss:$8 sps:$4 sm:$0xff]   ;;  %v242_v37 = vsub.s32 1, %v237_v36  ;;  %v238_v47 = vsub.s32 0, %v237_v36 }
  0x62   : > { %332 = vmatprep.subr.bf16.mxu0 %v770_v7  ;;  %v234_v38 = vld [vmem:[#allocation7] sm:$0x3]  ;;  %v395_v58 = vld [vmem:[#allocation7 + $0x2] sm:$0x3]  ;;  %s214_s20 = scalar_lea.vmem [#allocation8], %s649_s28  ;;  %s539_s7 = scalar_lea.sflag [#allocation4], %s1114_s26 }
  0x63   : > { %490 = vmatpush1.bf16.msra.mxu1 %v790_v22  ;;  %v243_v39 = vrot.slane %v234_v38, %v242_v37  ;;  %v239_v50 = vrot.slane %v234_v38, %v238_v47  ;;  %v404_v59 = vrot.slane %v395_v58, %v242_v37  ;;  %v400_v5 = vrot.slane %v395_v58, %v238_v47  ;;  %s552_s27 = sshll.u32 %s214_s20, 4  ;;  %p1187_p0 = scmp.ne.s32.totalorder %s1181_s21, 0  ;;  %s553_s27 = int_to_ptr.vmem [resolvable:$true] %s552_s27 }
  0x64   : > { %491 = vmatprep.subr.bf16.mxu1 %v791_v23  ;;  %s897_s8 = scalar_lea.vmem %s553_s27, 128  ;;  %s975_s10 = smov [#allocation8]  }
  0x65   : > { %333 = vmatpush1.bf16.msra.mxu0 %v772_v8  ;;  %p898_p11 = scmp.ne.s32.totalorder %s553_s27, %s897_s8  ;;  %s901_s11 = sshll.u32 %s975_s10, 4  ;;  %s902_s11 = int_to_ptr.vmem [resolvable:$false] %s901_s11 }
  0x66   : > { %334 = vmatprep.subr.bf16.mxu0 %v773_v9  ;;  %s903_s16 = scalar_lea.vmem %s902_s11, 256  ;;  %p904_p6 = scmp.lt.s32.totalorder %s553_s27, %s902_s11 }
  0x67   : > { %492 = vmatpush1.bf16.msra.mxu1 %v793_v24  ;;  %p899_p1 = pnand %p898_p11, %p1187_p0  ;;  %p905_p12 = scmp.lt.s32.totalorder %s903_s16, %s897_s8 }
  0x68   : > { %493 = vmatprep.subr.bf16.mxu1 %v794_v25 }
  0x69   : > { %335 = vmatpush1.bf16.msra.mxu0 %v775_v10  ;;  %p900_p2 = pneg %p899_p1  ;;  %p906_p3 = por %p905_p12, %p904_p6 }
  0x6a   : > { %336 = vmatprep.subr.bf16.mxu0 %v776_v11 }
  0x6b   : > { %494 = vmatpush1.bf16.msra.mxu1 %v796_v26  ;;  %p907_p9 = pnand %p906_p3, %p900_p2 }
  0x6c   : > { %495 = vmatprep.subr.bf16.mxu1 %v797_v27 }
  0x6d   : > { %337 = vmatpush1.bf16.msra.mxu0 %v778_v12 }
  0x6e   : > { %338 = vmatprep.subr.bf16.mxu0 %v779_v13 }
  0x6f   : > { %496 = vmatpush1.bf16.msra.mxu1 %v799_v28 }
  0x70   : > { %497 = vmatprep.subr.bf16.mxu1 %v800_v29 }
  0x71   : > { %339 = vmatpush1.bf16.msra.mxu0 %v781_v14 }
  0x72   : > { %340 = vmatprep.subr.bf16.mxu0 %v782_v15 }
  0x73   : > { %498 = vmatpush1.bf16.msra.mxu1 %v802_v30 }
  0x74   : > { %499 = vmatprep.subr.bf16.mxu1 %v803_v31 }
  0x75   : > { %341 = vmatpush1.bf16.msra.mxu0 %v784_v16 }
  0x77   : > { %500 = vmatpush1.bf16.msra.mxu1 %v805_v32 }
  0x78   : > { %359 = vmatmul.mubr.bf16.vlgmr.msra.gmra.mxu0 %v217_v18  ;;  %501 = vmatprep.subr.bf16.mxu1 %v806_v33 }
  0x7b   : > { %502 = vmatpush1.bf16.msra.mxu1 %v808_v34 }
 0x138   : > { %v360_v40 = vpop.f32.mrf.mxu0 }
 0x139   : > { %v361_v51 = vadd.f32 %v360_v40, %v239_v50 }
 0x13a   : > { %v362_v41 = vpop.f32.mrf.mxu0 }
 0x13b   : > { %v363_v42 = vadd.f32 %v362_v41, %v243_v39  ;;  %v372_v52 = vmax.f32 %v361_v51, 0.0 }
 0x13c   : > { %v364_v43 = vpop.f32.mrf.mxu0 }
 0x13d   : > { %v367_v44 = vsub.f32 0.0, %v363_v42  ;;  %v373_v53 = vsub.f32 %v372_v52, %v216_v17 }
 0x13e   : > { %v365_v45 = vpop.f32.mrf.mxu0 }
 0x13f   : > { %v368_v46 = vmul.f32 1.442695, %v367_v44 }
 0x141   : > { %809 = vpow2.f32 %v368_v46 }
 0x14e   : > { %v810_v48 = vpop.eup %809 }
 0x14f   : > { %v370_v49 = vadd.f32 1.0, %v810_v48 }
 0x151   : > { %811 = vrcp.f32 %v370_v49 }
 0x15e   : > { %v812_v54 = vpop.eup %811 }
 0x15f   : > { %v374_v55 = vmul.f32 %v812_v54, %v373_v53 }
 0x161   : > { %v375_v56 = vadd.f32 %v374_v55, %v216_v17 }
 0x163   : > { %v376_v57 = vpack.c.bf16 %v375_v56, %v375_v56 }
 0x165   : > { %520 = vmatmul.mubr.bf16.vlgmr.msra.gmra.mxu1 %v376_v57 }
 0x225   : > { %v521_v60 = vpop.f32.mrf.mxu1 }
 0x226   : > { %v522_v6 = vadd.f32 %v521_v60, %v400_v5 }
 0x227   : > { %v523_v61 = vpop.f32.mrf.mxu1 }
 0x228   : > { %v524_v62 = vadd.f32 %v523_v61, %v404_v59  ;;  %v533_v7 = vmax.f32 %v522_v6, 0.0 }
 0x229   : > { %v525_v63 = vpop.f32.mrf.mxu1 }
 0x22a   : > { %v528_v0 = vsub.f32 0.0, %v524_v62  ;;  %v534_v8 = vsub.f32 %v533_v7, %v375_v56 }
 0x22b   : > { %v526_v1 = vpop.f32.mrf.mxu1 }
 0x22c   : > { %v529_v2 = vmul.f32 1.442695, %v528_v0 }
 0x22e   : > { %813 = vpow2.f32 %v529_v2 }
 0x23b   : > { %v814_v3 = vpop.eup %813 }
 0x23c   : > { %v531_v4 = vadd.f32 1.0, %v814_v3 }
 0x23e   : > { %815 = vrcp.f32 %v531_v4 }
 0x24b   : > { %v816_v9 = vpop.eup %815 }
 0x24c   : > { %v535_v10 = vmul.f32 %v816_v9, %v534_v8 }
 0x24e   : > { %v536_v11 = vadd.f32 %v535_v10, %v375_v56 }
 0x250   : > { %537 = vst [vmem:[%s214_s20] sm:$0xff] %v536_v11 }
 0x251   : > { %910 = shalt.err (!%p907_p9)
}
 0x252   : > { %s911_s23 = scalar_lea.hbm %s550_s4, 128  ;;  %s915_s25 = scalar_lea.hbm %s1171_s3, 256 }
 0x253   : > { %p912_p13 = scmp.ne.s32.totalorder %s550_s4, %s911_s23  ;;  %p916_p4 = scmp.lt.s32.totalorder %s550_s4, %s1171_s3 }
 0x254   : > { %p917_p8 = scmp.lt.s32.totalorder %s915_s25, %s911_s23 }
 0x255   : > { %p913_p5 = pnand %p912_p13, %p1187_p0 }
 0x256   : > { %p918_p7 = por %p917_p8, %p916_p4 }
 0x257   : > { %p914_p10 = pneg %p913_p5 }
 0x259   : > { %p919_p11 = pnand %p918_p7, %p914_p10 }
 0x25b   : > { %922 = shalt.err (!%p919_p11)
}
 0x25c   : > { %699 = dma.vmem_to_hbm [thread:$0]  (%p1187_p0), %s553_s27, 128, %s550_s4, %s539_s7  }
 0x25d PF: > { %s564_s5 = sand.u32 1, %s953_s12   ;;  %p1188_p1 = scmp.ne.s32.totalorder %s1177_s19, 0 }
 0x25e   : > { %p1189_p2 = scmp.ge.s32.totalorder %s965_s15, 2  ;;  %s565_s6 = scalar_lea.sflag [#allocation4], %s564_s5 }
 0x260   : > { %p713_p6 = pnand %p1189_p2, %p1188_p1 }
 0x262   : > { %p714_p12 = pneg %p713_p6 }
 0x264   : > { %948 = dma.done.wait (%p714_p12), %s565_s6, 128  }
 0x265   : > { %950 = vsyncadd (%p714_p12), %s565_s6, 4294967168  ;;  %p17_p3 = scmp.ge.s32.totalorder %s1068_s9, 4   ;;  %s1190_s12 = smov %s957_s13 }
 0x266   : > { %s1191_s13 = smov %s961_s14  ;;  %s1192_s14 = smov %s1077_s17 }
 0x267   : > { %s1193_s15 = smov %s1068_s9  ;;  %19 = sbr.rel (!%p17_p3) target bundleno = 6 (0x6), region = 87 }
 0x26c   :  { %570 = vsyncpa [#allocation3], 1 }
 0x26d   :  { %572 = vsyncpa [#allocation3 + $0x1], 1 }
 0x26e   :  { %573 = vsyncpa [#allocation6], 1 }
 0x26f   :  { %574 = vsyncpa [#allocation4], 1 }
 0x270   :  { %576 = vsyncpa [#allocation4 + $0x1], 1 }

</bundles_post_ra>
